<compile_context>
chip_gen: v5e
topology: v5e:2x2
jax: 0.10.0
libtpu: 0.0.40
codegen_flags: <defaults>
</compile_context>

<pallas_src>
import functools

import jax
import jax.numpy as jnp
from jax.experimental import pallas as pl
from jax.experimental.pallas import tpu as pltpu

LANES = 128     # TPU vreg lane width
SUBLANES = 8    # TPU vreg sublane count (f32)


def _round_up(x, m):
    return ((x + m - 1) // m) * m


def mlp_kernel(x_ref, w1_ref, b1_ref, w2_ref, b2_ref, o_ref):
    # Linear 1 (MXU, f32 accumulation) + bias + ReLU (VPU).
    h = jnp.dot(x_ref[...], w1_ref[...], preferred_element_type=jnp.float32)
    h = jnp.maximum(h + b1_ref[...], 0.0)          # b1 is [1, H], broadcast over rows
    # Linear 2 (MXU, f32 accumulation) + bias.
    z = jnp.dot(h.astype(w2_ref.dtype), w2_ref[...],
                preferred_element_type=jnp.float32) + b2_ref[...]
    # Exact sigmoid (exp on EUP, exact divide); approx reciprocal removed for accuracy.
    o_ref[...] = (1.0 / (1.0 + jnp.exp(-z))).astype(o_ref.dtype)


@functools.partial(jax.jit, static_argnames=("tile_b", "compute_dtype"))
def classifier_original_forward(x, w1, b1, w2, b2, *, tile_b=1024,
                                compute_dtype=jnp.float32):
    """x: [B, D_in]; w1: [D_in, H]; b1: [H] or [1, H]; w2: [H, nlabel]; b2: [nlabel] or [1, nlabel].

    Weights are expected pre-transposed to [in, out] (PyTorch Linear stores [out, in]);
    do that transpose once at checkpoint-load time, not per call.
    """
    B, D_in = x.shape
    H, nlabel = w2.shape

    # Streamed operands optionally in bf16 (halves x HBM traffic); f32 accumulation
    # inside the kernel, f32 biases, f32 output.
    xc = x.astype(compute_dtype)
    w1c = w1.astype(compute_dtype)
    w2c = w2.astype(compute_dtype)
    b1r = b1.reshape(1, H).astype(jnp.float32)
    b2r = b2.reshape(1, nlabel).astype(jnp.float32)

    # Batch tile: aim for >= 2 balanced grid steps (v7x has 2 TCs) before capping
    # at tile_b; keep it a multiple of 8 sublanes. Ragged last block is fine.
    tb = _round_up(pl.cdiv(B, 2 * pl.cdiv(B, 2 * tile_b)), SUBLANES)
    tb = min(tb, max(_round_up(B, SUBLANES), SUBLANES))
    num_tiles = pl.cdiv(B, tb)

    return pl.pallas_call(
        mlp_kernel,
        out_shape=jax.ShapeDtypeStruct((B, nlabel), jnp.float32),
        grid_spec=pltpu.PrefetchScalarGridSpec(
            num_scalar_prefetch=0,
            grid=(num_tiles,),
            in_specs=[
                pl.BlockSpec((tb, D_in), lambda i: (i, 0)),     # streamed batch tile
                pl.BlockSpec((D_in, H), lambda i: (0, 0)),      # VMEM-resident weights
                pl.BlockSpec((1, H), lambda i: (0, 0)),
                pl.BlockSpec((H, nlabel), lambda i: (0, 0)),    # unpadded tiny output dim
                pl.BlockSpec((1, nlabel), lambda i: (0, 0)),
            ],
            out_specs=pl.BlockSpec((tb, nlabel), lambda i: (i, 0)),
        ),
        compiler_params=pltpu.CompilerParams(
            dimension_semantics=("parallel",),   # shard batch grid across TCs on v7x
        ),
    )(xc, w1c, b1r, w2c, b2r)


def reference_forward(x, w1, b1, w2, b2):
    h = jnp.maximum(x @ w1 + b1.reshape(1, -1), 0.0)
    return jax.nn.sigmoid(h @ w2 + b2.reshape(1, -1))


if __name__ == "__main__":
    key = jax.random.PRNGKey(0)
    kx, kw1, kb1, kw2, kb2 = jax.random.split(key, 5)

    # Small shapes consistent with the module: batch=8, D_in=32, H=64, nlabel=4.
    B, D_in, H, nlabel = 8, 32, 64, 4

    x = jax.random.normal(kx, (B, D_in), dtype=jnp.float32)
    # One-time weight prep: PyTorch Linear stores W as [out, in]; here we build the
    # [in, out] layout directly (the transpose belongs at load time, not per call).
    bound1 = 1.0 / (D_in ** 0.5)
    w1 = jax.random.uniform(kw1, (D_in, H), jnp.float32, -bound1, bound1)
    b1 = jax.random.uniform(kb1, (1, H), jnp.float32, -bound1, bound1)
    bound2 = 1.0 / (H ** 0.5)
    w2 = jax.random.uniform(kw2, (H, nlabel), jnp.float32, -bound2, bound2)
    b2 = jax.random.uniform(kb2, (1, nlabel), jnp.float32, -bound2, bound2)

    # f32 path, exact sigmoid -> tight tolerance.
    out = jax.block_until_ready(classifier_original_forward(x, w1, b1, w2, b2))
    ref = reference_forward(x, w1, b1, w2, b2)
    assert out.shape == (B, nlabel)
    assert bool(jnp.allclose(out, ref, atol=2e-3, rtol=2e-3))

    # Larger, non-multiple batch: exercises the 2-step grid and the ragged last
    # block (no wrapper padding / slicing anymore).
    B2 = 300
    x2 = jax.random.normal(jax.random.PRNGKey(1), (B2, D_in), dtype=jnp.float32)
    out2 = jax.block_until_ready(classifier_original_forward(x2, w1, b1, w2, b2))
    ref2 = reference_forward(x2, w1, b1, w2, b2)
    assert out2.shape == (B2, nlabel)
    assert bool(jnp.allclose(out2, ref2, atol=2e-3, rtol=2e-3))

    # bf16 streaming path (per perf review): f32 accumulation, looser tolerance.
    out3 = jax.block_until_ready(
        classifier_original_forward(x2, w1, b1, w2, b2, compute_dtype=jnp.bfloat16))
    assert out3.shape == (B2, nlabel)
    assert bool(jnp.allclose(out3, ref2, atol=3e-2, rtol=3e-2))

    print("KERNEL_OK")
</pallas_src>

<mosaic_0001>
module attributes {stable_mosaic.version = 11 : i64} {
  func.func @mlp_kernel(%arg0: i32, %arg1: memref<8x32xf32, #tpu.memory_space<vmem>>, %arg2: memref<32x64xf32, #tpu.memory_space<vmem>>, %arg3: memref<1x64xf32, #tpu.memory_space<vmem>>, %arg4: memref<64x4xf32, #tpu.memory_space<vmem>>, %arg5: memref<1x4xf32, #tpu.memory_space<vmem>>, %arg6: memref<8x4xf32, #tpu.memory_space<vmem>>) attributes {dimension_semantics = [#tpu.dimension_semantics<parallel>], iteration_bounds = array<i64: 1>, scalar_prefetch = 0 : i64, scratch_operands = 0 : i64, tpu.core_type = #tpu.core_type<tc>, window_params = [{transform_indices = @transform_0, window_bounds = array<i64: 8, 32>}, {pipeline_mode = #tpu.pipeline_mode<synchronous>, transform_indices = @transform_1, window_bounds = array<i64: 32, 64>}, {pipeline_mode = #tpu.pipeline_mode<synchronous>, transform_indices = @transform_2, window_bounds = array<i64: 1, 64>}, {pipeline_mode = #tpu.pipeline_mode<synchronous>, transform_indices = @transform_3, window_bounds = array<i64: 64, 4>}, {pipeline_mode = #tpu.pipeline_mode<synchronous>, transform_indices = @transform_4, window_bounds = array<i64: 1, 4>}, {transform_indices = @transform_5, window_bounds = array<i64: 8, 4>}]} {
    %c0 = arith.constant 0 : index
    %c0_0 = arith.constant 0 : index
    %0 = vector.load %arg1[%c0, %c0_0] : memref<8x32xf32, #tpu.memory_space<vmem>>, vector<8x32xf32>
    %c0_1 = arith.constant 0 : index
    %c0_2 = arith.constant 0 : index
    %1 = vector.load %arg2[%c0_1, %c0_2] : memref<32x64xf32, #tpu.memory_space<vmem>>, vector<32x64xf32>
    %cst = arith.constant dense<0.000000e+00> : vector<8x64xf32>
    %2 = tpu.matmul %0, %1, %cst {dimension_numbers = #tpu.dot_dimension_numbers<[1], [0], [0], [1], [0, 0, 1, 1], [], []>} : vector<8x32xf32>, vector<32x64xf32>, vector<8x64xf32> -> vector<8x64xf32>
    %c0_3 = arith.constant 0 : index
    %c0_4 = arith.constant 0 : index
    %3 = vector.load %arg3[%c0_3, %c0_4] : memref<1x64xf32, #tpu.memory_space<vmem>>, vector<1x64xf32>
    %4 = vector.broadcast %3 : vector<1x64xf32> to vector<8x64xf32>
    %5 = arith.addf %2, %4 : vector<8x64xf32>
    %cst_5 = arith.constant 0.000000e+00 : f32
    %6 = vector.broadcast %cst_5 : f32 to vector<8x64xf32>
    %7 = arith.maximumf %5, %6 : vector<8x64xf32>
    %c0_6 = arith.constant 0 : index
    %c0_7 = arith.constant 0 : index
    %8 = vector.load %arg4[%c0_6, %c0_7] : memref<64x4xf32, #tpu.memory_space<vmem>>, vector<64x4xf32>
    %cst_8 = arith.constant dense<0.000000e+00> : vector<8x4xf32>
    %9 = tpu.matmul %7, %8, %cst_8 {dimension_numbers = #tpu.dot_dimension_numbers<[1], [0], [0], [1], [0, 0, 1, 1], [], []>} : vector<8x64xf32>, vector<64x4xf32>, vector<8x4xf32> -> vector<8x4xf32>
    %c0_9 = arith.constant 0 : index
    %c0_10 = arith.constant 0 : index
    %10 = vector.load %arg5[%c0_9, %c0_10] : memref<1x4xf32, #tpu.memory_space<vmem>>, vector<1x4xf32>
    %11 = vector.broadcast %10 : vector<1x4xf32> to vector<8x4xf32>
    %12 = arith.addf %9, %11 : vector<8x4xf32>
    %cst_11 = arith.constant 0.000000e+00 : f32
    %13 = vector.broadcast %cst_11 : f32 to vector<8x4xf32>
    %14 = arith.subf %13, %12 : vector<8x4xf32>
    %15 = math.exp %14 : vector<8x4xf32>
    %cst_12 = arith.constant 1.000000e+00 : f32
    %16 = vector.broadcast %cst_12 : f32 to vector<8x4xf32>
    %17 = arith.addf %16, %15 : vector<8x4xf32>
    %cst_13 = arith.constant 1.000000e+00 : f32
    %18 = vector.broadcast %cst_13 : f32 to vector<8x4xf32>
    %19 = arith.divf %18, %17 : vector<8x4xf32>
    %c0_14 = arith.constant 0 : index
    %c0_15 = arith.constant 0 : index
    %20 = vector.load %arg6[%c0_14, %c0_15] : memref<8x4xf32, #tpu.memory_space<vmem>>, vector<8x4xf32>
    tpu.vector_store %arg6[%c0_14, %c0_15], %19 {strides = array<i32>} : memref<8x4xf32, #tpu.memory_space<vmem>>, vector<8x4xf32>,
    return
  }
  func.func @transform_0(%arg0: i32) -> (i32, i32) {
    %c0_i32 = arith.constant 0 : i32
    %c0_i32_0 = arith.constant 0 : i32
    return %arg0, %c0_i32 : i32, i32
  }
  func.func @transform_1(%arg0: i32) -> (i32, i32) {
    %c0_i32 = arith.constant 0 : i32
    %c0_i32_0 = arith.constant 0 : i32
    %c0_i32_1 = arith.constant 0 : i32
    return %c0_i32, %c0_i32_0 : i32, i32
  }
  func.func @transform_2(%arg0: i32) -> (i32, i32) {
    %c0_i32 = arith.constant 0 : i32
    %c0_i32_0 = arith.constant 0 : i32
    %c0_i32_1 = arith.constant 0 : i32
    return %c0_i32, %c0_i32_0 : i32, i32
  }
  func.func @transform_3(%arg0: i32) -> (i32, i32) {
    %c0_i32 = arith.constant 0 : i32
    %c0_i32_0 = arith.constant 0 : i32
    %c0_i32_1 = arith.constant 0 : i32
    return %c0_i32, %c0_i32_0 : i32, i32
  }
  func.func @transform_4(%arg0: i32) -> (i32, i32) {
    %c0_i32 = arith.constant 0 : i32
    %c0_i32_0 = arith.constant 0 : i32
    %c0_i32_1 = arith.constant 0 : i32
    return %c0_i32, %c0_i32_0 : i32, i32
  }
  func.func @transform_5(%arg0: i32) -> (i32, i32) {
    %c0_i32 = arith.constant 0 : i32
    %c0_i32_0 = arith.constant 0 : i32
    return %arg0, %c0_i32 : i32, i32
  }
}

</mosaic_0001>

<bundles_post_ra>
// kernel: classifier_original_forward.1
= control target key start
LH: loop header
LB: loop body
LE: loop exit
PB: predicated region body
PF: predicated region fallthrough
CT: control target
= control target key end

     0   :  { %vm29_vm0 = vcmask 261120   ;;  %vm66_vm1 = vcmask 523264   ;;  %vm109_vm5 = vcmask 31744   ;;  %s201_s1 = inlined_call_operand.vmem [shape: f32[32,64], index: 1, kind: input, shape index: {}]   ;;  %s202_s3 = inlined_call_operand.vmem [shape: f32[64,4], index: 3, kind: input, shape index: {}]   ;;  %s203_s0 = inlined_call_operand.vmem [shape: f32[8,32], index: 0, kind: input, shape index: {}]   ;;  %s204_s2 = inlined_call_operand.vmem [shape: f32[1,64], index: 2, kind: input, shape index: {}]   ;;  %s205_s4 = inlined_call_operand.vmem [shape: f32[1,4], index: 4, kind: input, shape index: {}]   ;;  %s206_s5 = inlined_call_operand.vmem [shape: f32[8,4], index: 5, kind: output, shape index: {}]  }
   0x1   :  { %v24_v0 = vld [vmem:[%s201_s1 + $0x18] sm:$0xff]  ;;  %v23_v1 = vld [vmem:[%s201_s1 + $0x10] sm:$0xff]  ;;  %v22_v3 = vld [vmem:[%s201_s1 + $0x8] sm:$0xff] }
   0x2   :  { %45 = vmatpush.msra.mxu0 %v24_v0  ;;  %v61_v2 = vld [vmem:[%s202_s3 + $0x38] sm:$0xff]  ;;  %v60_v4 = vld [vmem:[%s202_s3 + $0x30] sm:$0xff]  ;;  %v59_v5 = vld [vmem:[%s202_s3 + $0x28] sm:$0xff] }
   0x3   :  { %78 = vmatpush.msra.mxu1 %v61_v2  ;;  %v21_v6 = vld [vmem:[%s201_s1] sm:$0xff]  ;;  %v57_v9 = vld [vmem:[%s202_s3 + $0x18] sm:$0xff]  ;;  %v56_v10 = vld [vmem:[%s202_s3 + $0x10] sm:$0xff] }
   0x4   :  { %46 = vmatpush.msra.mxu0 %v23_v1  ;;  %v20_v7 = vld [vmem:[%s203_s0] sm:$0xff]  ;;  %v55_v11 = vld [vmem:[%s202_s3 + $0x8] sm:$0xff] }
   0x5   :  { %79 = vmatpush.msra.mxu1 %v60_v4  ;;  %v58_v8 = vld [vmem:[%s202_s3 + $0x20] sm:$0xff] }
   0x6   :  { %47 = vmatpush.msra.mxu0 %v22_v3  ;;  %v54_v12 = vld [vmem:[%s202_s3] sm:$0xff] }
   0x7   :  { %80 = vmatpush.msra.mxu1 %v59_v5  ;;  %v117_v13 = vld [vmem:[%s204_s2] ss:$0 sm:$0xff] }
   0x8   :  { %48 = vmatpush.msra.mxu0 %v21_v6  ;;  %v118_v17 = vld [vmem:[%s205_s4] ss:$0 sm:$0xff] }
   0x9   :  { %115 = vmatmul.msk.f32.vlgmr.msra.gmra.mxu0 %vm29_vm0, %v20_v7  ;;  %81 = vmatpush.msra.mxu1 %v58_v8 }
   0xb   :  { %82 = vmatpush.msra.mxu1 %v57_v9 }
   0xd   :  { %83 = vmatpush.msra.mxu1 %v56_v10 }
   0xf   :  { %84 = vmatpush.msra.mxu1 %v55_v11 }
  0x11   :  { %85 = vmatpush.msra.mxu1 %v54_v12 }
  0x86   :  { %v50_v14 = vpop.f32.mrf.mxu0 }
  0x87   :  { %v51_v15 = vadd.f32 %v117_v13, %v50_v14 }
  0x89   :  { %v53_v16 = vmax.f32 %v51_v15, 0.0 }
  0x8b   :  { %116 = vmatmul.msk.f32.vlgmr.msra.gmra.mxu1 %vm66_vm1, %v53_v16 }
 0x108   :  { %v87_v18 = vpop.f32.mrf.mxu1 }
 0x109   :  { %v88_v19 = vadd.f32 %v118_v17, %v87_v18 }
 0x10b   :  { %v90_v20 = vsub.f32 0.0, %v88_v19 }
 0x10d   :  { %v91_v21 = vmul.f32 1.442695, %v90_v20 }
 0x10f   :  { %119 = vpow2.f32 %v91_v21 }
 0x115   :  { %v120_v22 = vpop.eup %119 }
 0x116   :  { %v93_v23 = vadd.f32 1.0, %v120_v22 }
 0x118   :  { %121 = vrcp.f32 %v93_v23  ;;  %v105_v27 = vand.u32 2147483648, %v93_v23  ;;  %v103_v29 = vand.u32 2147483647, %v93_v23  ;;  %vm99_vm3 = vweird.f32 %v93_v23 }
 0x11a   :  { %v106_v31 = vor.u32 1.1754944e-38, %v105_v27  ;;  %vm104_vm6 = vcmp.eq.f32.partialorder %v103_v29, 8.507059e+37 }
 0x11e   :  { %v122_v24 = vpop.eup %121 }
 0x11f   :  { %v95_v25 = vmul.f32 %v122_v24, %v93_v23  ;;  %vm100_vm2 = vweird.f32 %v122_v24 }
 0x120   :  { %vm101_vm4 = vmor %vm99_vm3, %vm100_vm2 }
 0x121   :  { %v96_v26 = vsub.f32 1.0, %v95_v25 }
 0x123   :  { %v97_v28 = vmul.f32 %v122_v24, %v96_v26 }
 0x125   :  { %v98_v30 = vadd.f32 %v122_v24, %v97_v28 }
 0x127   :  { %v102_v32 = vsel %vm101_vm4, %v122_v24, %v98_v30 }
 0x128   :  { %v107_v33 = vsel %vm104_vm6, %v106_v31, %v102_v32 }
 0x129   :  { %110 = vst.msk [vmem:[%s206_s5] sm:$0xff] %vm109_vm5, %v107_v33 }

</bundles_post_ra>
